<compile_context>
chip_gen: v6e
topology: v6e:2x2x1
jax: 0.10.0
libtpu: 0.0.40
codegen_flags: <defaults>
</compile_context>

<pallas_src>
import jax
import jax.numpy as jnp
from jax.experimental import pallas as pl
from jax.experimental.pallas import tpu as pltpu


def _round_up(x, m):
    return ((x + m - 1) // m) * m


# ---------------------------------------------------------------------------
# Kernels
# ---------------------------------------------------------------------------
def _pool_kernel(x_ref, w_ref, b_ref, o_ref):
    # x_ref: (TB, S, F) input dtype | w_ref: (F, Opad) input dtype (scale folded in)
    # b_ref: (1, Opad) f32          | o_ref: (TB, Opad) input dtype
    x = x_ref[...]
    pooled = jnp.sum(x.astype(jnp.float32), axis=1)      # f32 accumulation over S
    pooled = pooled.astype(x.dtype)                      # native MXU operand dtype
    y = jnp.dot(pooled, w_ref[...], preferred_element_type=jnp.float32)
    y = y + b_ref[...]
    o_ref[...] = jnp.maximum(y, 0.0).astype(o_ref.dtype)


def _linear_kernel(x_ref, w_ref, b_ref, o_ref):
    # x_ref: (TB, F)  -- pooling-free row-wise Linear+ReLU (walk_linear_out path)
    y = jnp.dot(x_ref[...], w_ref[...], preferred_element_type=jnp.float32)
    y = y + b_ref[...]
    o_ref[...] = jnp.maximum(y, 0.0).astype(o_ref.dtype)


# ---------------------------------------------------------------------------
# Wrapper
# ---------------------------------------------------------------------------
_X_VMEM_BUDGET = 6 * 1024 * 1024   # keeps double-buffered tiles inside v5e's 16 MiB


def _choose_tile(rows, bytes_per_row):
    """Largest 8/128-aligned batch tile whose double-buffered footprint fits."""
    tb = _X_VMEM_BUDGET // max(int(bytes_per_row), 1)
    tb = max(8, min(tb, 1024))
    tb = (tb // 128) * 128 if tb >= 128 else (tb // 8) * 8
    tb = min(max(tb, 8), _round_up(rows, 8))
    return max(tb, 8)


def set_pooler_forward(X, W_out, b_out, agg="sum", walk_linear_out=False):
    """Pallas implementation of SetPooler.forward.

    X:      (..., S, F) input set
    W_out:  (O, F)  PyTorch-convention Linear weight of out_proj[0]
    b_out:  (O,)    Linear bias
    """
    F_dim = X.shape[-1]
    O = W_out.shape[0]
    O_pad = _round_up(O, 128)          # lane-dense output stores
    dtype = X.dtype
    itemsize = jnp.dtype(dtype).itemsize

    if walk_linear_out:
        scale = 1.0
    else:
        assert agg in ("sum", "mean")
        scale = 1.0 if agg == "sum" else 1.0 / X.shape[-2]

    # Fold the mean scale into the weight (host side); pad O to 128 lanes.
    Wk = (W_out.T.astype(jnp.float32) * scale).astype(dtype)          # (F, O)
    Wk = jnp.pad(Wk, ((0, 0), (0, O_pad - O)))                        # (F, O_pad)
    bk = jnp.pad(b_out.astype(jnp.float32), (0, O_pad - O)).reshape(1, O_pad)

    if walk_linear_out:
        # Dense 2-D GEMM over all rows (no size-1 sublane padding).
        lead = X.shape[:-1]
        Xk = X.reshape(-1, F_dim)
        rows = Xk.shape[0]
        bytes_per_row = 2 * (F_dim * itemsize + O_pad * itemsize)
        TB = _choose_tile(rows, bytes_per_row)
        rows_pad = _round_up(rows, TB)
        Xk = jnp.pad(Xk, ((0, rows_pad - rows), (0, 0)))

        cost = pl.CostEstimate(
            flops=int(2 * rows_pad * F_dim * O_pad),
            transcendentals=0,
            bytes_accessed=int(Xk.size * itemsize + Wk.size * itemsize
                               + bk.size * 4 + rows_pad * O_pad * itemsize),
        )
        out = pl.pallas_call(
            _linear_kernel,
            out_shape=jax.ShapeDtypeStruct((rows_pad, O_pad), dtype),
            grid_spec=pl.GridSpec(
                grid=(rows_pad // TB,),
                in_specs=[
                    pl.BlockSpec((TB, F_dim), lambda i: (i, 0)),
                    pl.BlockSpec((F_dim, O_pad), lambda i: (0, 0)),
                    pl.BlockSpec((1, O_pad), lambda i: (0, 0)),
                ],
                out_specs=pl.BlockSpec((TB, O_pad), lambda i: (i, 0)),
            ),
            compiler_params=pltpu.CompilerParams(
                dimension_semantics=("parallel",)),
            cost_estimate=cost,
        )(Xk, Wk, bk)
        return out[:rows, :O].reshape(*lead, O)

    # Pooled path: sum/mean over the set dim, then Linear + ReLU.
    S = X.shape[-2]
    lead = X.shape[:-2]
    Xk = X.reshape(-1, S, F_dim)
    B = Xk.shape[0]
    bytes_per_row = 2 * (S * F_dim * itemsize + O_pad * itemsize)
    TB = _choose_tile(B, bytes_per_row)
    B_pad = _round_up(B, TB)
    Xk = jnp.pad(Xk, ((0, B_pad - B), (0, 0), (0, 0)))

    cost = pl.CostEstimate(
        flops=int(B_pad * S * F_dim + 2 * B_pad * F_dim * O_pad),
        transcendentals=0,
        bytes_accessed=int(Xk.size * itemsize + Wk.size * itemsize
                           + bk.size * 4 + B_pad * O_pad * itemsize),
    )
    out = pl.pallas_call(
        _pool_kernel,
        out_shape=jax.ShapeDtypeStruct((B_pad, O_pad), dtype),
        grid_spec=pl.GridSpec(
            grid=(B_pad // TB,),
            in_specs=[
                pl.BlockSpec((TB, S, F_dim), lambda i: (i, 0, 0)),
                pl.BlockSpec((F_dim, O_pad), lambda i: (0, 0)),
                pl.BlockSpec((1, O_pad), lambda i: (0, 0)),
            ],
            out_specs=pl.BlockSpec((TB, O_pad), lambda i: (i, 0)),
        ),
        compiler_params=pltpu.CompilerParams(
            dimension_semantics=("parallel",)),
        cost_estimate=cost,
    )(Xk, Wk, bk)
    return out[:B, :O].reshape(*lead, O)


# ---------------------------------------------------------------------------
# Parameter init helpers (match nn.Linear / xavier init for fidelity)
# ---------------------------------------------------------------------------
def _xavier_uniform(key, shape):
    fan_in, fan_out = shape[1], shape[0]
    limit = (6.0 / (fan_in + fan_out)) ** 0.5
    return jax.random.uniform(key, shape, jnp.float32, -limit, limit)


if __name__ == "__main__":
    key = jax.random.PRNGKey(0)
    k_x, k_w, k_b, k_mp, k_xp, k_a0, k_a1 = jax.random.split(key, 7)

    # Small shapes: batch=2, set size=8, n_features=32, out_features=32
    B, S, n_features, out_features = 2, 8, 32, 32

    X = jax.random.normal(k_x, (B, S, n_features), jnp.float32)

    # Parameters of SetPooler.__init__.  Only out_proj's Linear participates in
    # the forward pass; the others are constructed for fidelity but unused.
    W_out = _xavier_uniform(k_w, (out_features, n_features))          # out_proj[0].weight
    b_out = jax.random.uniform(k_b, (out_features,), jnp.float32,
                               -1.0 / n_features ** 0.5, 1.0 / n_features ** 0.5)
    _W_mean = _xavier_uniform(k_mp, (n_features, n_features))         # mean_proj (unused)
    _W_max = _xavier_uniform(k_xp, (n_features, n_features))          # max_proj (unused)
    _attn_w = jnp.stack([_xavier_uniform(k_a0, (n_features, n_features)),
                         _xavier_uniform(k_a1, (n_features, n_features))])  # unused

    # Default forward: agg='sum', walk_linear_out=False
    y = jax.block_until_ready(set_pooler_forward(X, W_out, b_out, agg="sum"))
    ref = jnp.maximum(jnp.sum(X, axis=-2) @ W_out.T + b_out, 0.0)
    assert y.shape == (B, out_features)
    assert jnp.allclose(y, ref, atol=1e-5, rtol=1e-5)

    # agg='mean' path (scale folded into the weight).
    y_mean = jax.block_until_ready(set_pooler_forward(X, W_out, b_out, agg="mean"))
    ref_mean = jnp.maximum(jnp.mean(X, axis=-2) @ W_out.T + b_out, 0.0)
    assert jnp.allclose(y_mean, ref_mean, atol=1e-5, rtol=1e-5)

    # walk_linear_out path (row-wise Linear + ReLU, dense 2-D GEMM).
    y_lin = jax.block_until_ready(
        set_pooler_forward(X, W_out, b_out, walk_linear_out=True))
    ref_lin = jnp.maximum(X @ W_out.T + b_out, 0.0)
    assert y_lin.shape == (B, S, out_features)
    assert jnp.allclose(y_lin, ref_lin, atol=1e-5, rtol=1e-5)

    print("KERNEL_OK")
</pallas_src>

<mosaic_0001>
module attributes {stable_mosaic.version = 11 : i64} {
  func.func @_pool_kernel(%arg0: i32, %arg1: memref<8x8x32xf32, #tpu.memory_space<vmem>>, %arg2: memref<32x128xf32, #tpu.memory_space<vmem>>, %arg3: memref<1x128xf32, #tpu.memory_space<vmem>>, %arg4: memref<8x128xf32, #tpu.memory_space<vmem>>) attributes {dimension_semantics = [#tpu.dimension_semantics<parallel>], iteration_bounds = array<i64: 1>, scalar_prefetch = 0 : i64, scratch_operands = 0 : i64, tpu.core_type = #tpu.core_type<tc>, window_params = [{transform_indices = @transform_0, window_bounds = array<i64: 8, 8, 32>}, {pipeline_mode = #tpu.pipeline_mode<synchronous>, transform_indices = @transform_1, window_bounds = array<i64: 32, 128>}, {pipeline_mode = #tpu.pipeline_mode<synchronous>, transform_indices = @transform_2, window_bounds = array<i64: 1, 128>}, {transform_indices = @transform_3, window_bounds = array<i64: 8, 128>}]} {
    %c0 = arith.constant 0 : index
    %c0_0 = arith.constant 0 : index
    %c0_1 = arith.constant 0 : index
    %0 = vector.load %arg1[%c0, %c0_0, %c0_1] : memref<8x8x32xf32, #tpu.memory_space<vmem>>, vector<8x8x32xf32>
    %cst = arith.constant dense<0.000000e+00> : vector<8x32xf32>
    %1 = vector.multi_reduction <add>, %0, %cst [1] : vector<8x8x32xf32> to vector<8x32xf32>
    %c0_2 = arith.constant 0 : index
    %c0_3 = arith.constant 0 : index
    %2 = vector.load %arg2[%c0_2, %c0_3] : memref<32x128xf32, #tpu.memory_space<vmem>>, vector<32x128xf32>
    %cst_4 = arith.constant dense<0.000000e+00> : vector<8x128xf32>
    %3 = tpu.matmul %1, %2, %cst_4 {dimension_numbers = #tpu.dot_dimension_numbers<[1], [0], [0], [1], [0, 0, 1, 1], [], []>} : vector<8x32xf32>, vector<32x128xf32>, vector<8x128xf32> -> vector<8x128xf32>
    %c0_5 = arith.constant 0 : index
    %c0_6 = arith.constant 0 : index
    %4 = vector.load %arg3[%c0_5, %c0_6] : memref<1x128xf32, #tpu.memory_space<vmem>>, vector<1x128xf32>
    %5 = vector.broadcast %4 : vector<1x128xf32> to vector<8x128xf32>
    %6 = arith.addf %3, %5 : vector<8x128xf32>
    %cst_7 = arith.constant 0.000000e+00 : f32
    %7 = vector.broadcast %cst_7 : f32 to vector<8x128xf32>
    %8 = arith.maximumf %6, %7 : vector<8x128xf32>
    %c0_8 = arith.constant 0 : index
    %c0_9 = arith.constant 0 : index
    %9 = vector.load %arg4[%c0_8, %c0_9] : memref<8x128xf32, #tpu.memory_space<vmem>>, vector<8x128xf32>
    tpu.vector_store %arg4[%c0_8, %c0_9], %8 {strides = array<i32>} : memref<8x128xf32, #tpu.memory_space<vmem>>, vector<8x128xf32>,
    return
  }
  func.func @transform_0(%arg0: i32) -> (i32, i32, i32) {
    %c0_i32 = arith.constant 0 : i32
    %c0_i32_0 = arith.constant 0 : i32
    %c0_i32_1 = arith.constant 0 : i32
    return %arg0, %c0_i32, %c0_i32_0 : i32, i32, i32
  }
  func.func @transform_1(%arg0: i32) -> (i32, i32) {
    %c0_i32 = arith.constant 0 : i32
    %c0_i32_0 = arith.constant 0 : i32
    %c0_i32_1 = arith.constant 0 : i32
    return %c0_i32, %c0_i32_0 : i32, i32
  }
  func.func @transform_2(%arg0: i32) -> (i32, i32) {
    %c0_i32 = arith.constant 0 : i32
    %c0_i32_0 = arith.constant 0 : i32
    %c0_i32_1 = arith.constant 0 : i32
    return %c0_i32, %c0_i32_0 : i32, i32
  }
  func.func @transform_3(%arg0: i32) -> (i32, i32) {
    %c0_i32 = arith.constant 0 : i32
    %c0_i32_0 = arith.constant 0 : i32
    return %arg0, %c0_i32 : i32, i32
  }
}

</mosaic_0001>

<bundles_post_ra>
// kernel: tpu_custom_call.1
= control target key start
LH: loop header
LB: loop body
LE: loop exit
PB: predicated region body
PF: predicated region fallthrough
CT: control target
= control target key end

     0   :  { %8 = vsyncpa [#allocation3], 0  ;;  %s374_s0 = inlined_call_operand.hbm [shape: f32[8,8,32], index: 0, kind: input, shape index: {}]   ;;  %s375_s1 = inlined_call_operand.hbm [shape: f32[32,128], index: 1, kind: input, shape index: {}]   ;;  %s376_s2 = inlined_call_operand.vmem [shape: f32[1,128], index: 2, kind: input, shape index: {}]   ;;  %s377_s3 = inlined_call_operand.hbm [shape: f32[8,128], index: 3, kind: output, shape index: {}]  }
   0x1   :  { %9 = vsyncpa [#allocation6], 0 }
   0x2   :  { %10 = vsyncpa [#allocation4], 0  ;;  %s322_s12 = smov [#allocation2]  }
   0x3   :  { %s16_s13 = sshll.u32 %s322_s12, 4  ;;  %s17_s13 = int_to_ptr.vmem [resolvable:$true] %s16_s13 }
   0x4   :  { %s264_s14 = scalar_lea.vmem %s17_s13, 1024  ;;  %p269_p1 = scmp.lt.s32.totalorder %s17_s13, %s17_s13 }
   0x5   :  { %p265_p0 = scmp.ne.s32.totalorder %s17_s13, %s264_s14  ;;  %p270_p2 = scmp.lt.s32.totalorder %s264_s14, %s264_s14 }
   0x7   :  { %p271_p3 = por %p270_p2, %p269_p1 }
   0x9   :  { %p272_p4 = pnand %p271_p3, %p265_p0 }
   0xb   :  { %275 = shalt.err (!%p272_p4)
}
   0xc   :  { %s323_s15 = smov 128   ;;  %s324_s16 = smov 8  }
   0xd   :  { %22 = dma.hbm_to_vmem [thread:$0]  %s374_s0, 1024, %s17_s13, [#allocation3], %s323_s15, %s323_s15, %s324_s16  }
   0xe   :  { %s325_s19 = smov [#allocation5]  }
   0xf   :  { %s28_s20 = sshll.u32 %s325_s19, 4  ;;  %s29_s20 = int_to_ptr.vmem [resolvable:$true] %s28_s20 }
  0x10   :  { %s284_s21 = scalar_lea.vmem %s29_s20, 512  ;;  %p289_p6 = scmp.lt.s32.totalorder %s29_s20, %s29_s20 }
  0x11   :  { %p285_p5 = scmp.ne.s32.totalorder %s29_s20, %s284_s21  ;;  %p290_p7 = scmp.lt.s32.totalorder %s284_s21, %s284_s21 }
  0x13   :  { %p291_p8 = por %p290_p7, %p289_p6 }
  0x15   :  { %p292_p9 = pnand %p291_p8, %p285_p5 }
  0x17   :  { %295 = shalt.err (!%p292_p9)
}
  0x18   :  { %34 = dma.hbm_to_vmem [thread:$0]  %s375_s1, 512, %s29_s20, [#allocation6], %s323_s15, %s323_s15, %s324_s16  }
  0x19   :  { %316 = dma.done.wait [#allocation3], 1024  }
  0x1a   :  { %317 = vsyncadd [#allocation3], 4294966272 }
  0x1b   :  { %318 = dma.done.wait [#allocation6], 512  }
  0x1c   :  { %319 = vsyncadd [#allocation6], 4294966784  ;;  %v326_v0 = vmov 0.0   ;;  %vm327_vm0 = vmmov 0   ;;  %vm51_vm1 = vcmask 261120   ;;  %v111_v1 = vld [vmem:[#allocation5 + $0x18] sm:$0xff] }
  0x1d   :  { %238 = vmatprep.subr.mxu0 %v326_v0  ;;  %246 = vmatprep.mubr.msk.f32.mxu0 %vm327_vm0, %v326_v0  ;;  %v110_v2 = vld [vmem:[#allocation5 + $0x10] sm:$0xff]  ;;  %v109_v3 = vld [vmem:[#allocation5 + $0x8] sm:$0xff]  ;;  %v43_v4 = vld [vmem:[#allocation2] sm:$0xff]  ;;  %vm127_vm2 = vcmask 1041409   ;;  %vm129_vm3 = vcmask 1042434   ;;  %vm131_vm4 = vcmask 1043459  }
  0x1e   :  { %239 = vmatpush3.msra.mxu0 %v111_v1  ;;  %v44_v5 = vld [vmem:[#allocation2 + $0x8] sm:$0xff]  ;;  %v45_v6 = vld [vmem:[#allocation2 + $0x10] sm:$0xff]  ;;  %v46_v7 = vld [vmem:[#allocation2 + $0x18] sm:$0xff]  ;;  %v52_v9 = vsel %vm51_vm1, %v43_v4, 0.0  ;;  %vm133_vm5 = vcmask 1044484   ;;  %vm135_vm6 = vcmask 1045509  }
  0x1f   :  { %240 = vmatprep.subr.mxu0 %v326_v0  ;;  %v47_v8 = vld [vmem:[#allocation2 + $0x20] sm:$0xff]  ;;  %v59_v10 = vsel %vm51_vm1, %v44_v5, 0.0  ;;  %v48_v11 = vld [vmem:[#allocation2 + $0x28] sm:$0xff]  ;;  %v49_v12 = vld [vmem:[#allocation2 + $0x30] sm:$0xff]  ;;  %v53_v14 = vrot.slane %v52_v9, 4  ;;  %v66_v16 = vsel %vm51_vm1, %v45_v6, 0.0 }
  0x20   :  { %241 = vmatpush3.msra.mxu0 %v110_v2  ;;  %v50_v13 = vld [vmem:[#allocation2 + $0x38] sm:$0xff]  ;;  %v60_v15 = vrot.slane %v59_v10, 4  ;;  %v108_v17 = vld [vmem:[#allocation5] sm:$0xff]  ;;  %v67_v18 = vrot.slane %v66_v16, 4  ;;  %v73_v19 = vsel %vm51_vm1, %v46_v7, 0.0  ;;  %v80_v20 = vsel %vm51_vm1, %v47_v8, 0.0 }
  0x21   :  { %242 = vmatprep.subr.mxu0 %v326_v0  ;;  %v87_v21 = vsel %vm51_vm1, %v48_v11, 0.0  ;;  %v54_v22 = vadd.f32 %v53_v14, %v52_v9  ;;  %v74_v24 = vrot.slane %v73_v19, 4  ;;  %v81_v25 = vrot.slane %v80_v20, 4  ;;  %s328_s24 = smov [#allocation7]  }
  0x22   :  { %243 = vmatpush3.msra.mxu0 %v109_v3  ;;  %v61_v23 = vadd.f32 %v60_v15, %v59_v10  ;;  %v68_v26 = vadd.f32 %v67_v18, %v66_v16  ;;  %v88_v27 = vrot.slane %v87_v21, 4  ;;  %v94_v28 = vsel %vm51_vm1, %v49_v12, 0.0  ;;  %v231_v12 = vld [vmem:[%s376_s2] ss:$0 sm:$0xff]  ;;  %s221_s25 = sshll.u32 %s328_s24, 4  ;;  %s222_s25 = int_to_ptr.vmem [resolvable:$true] %s221_s25 }
  0x23   :  { %244 = vmatprep.subr.mxu0 %v326_v0  ;;  %v101_v29 = vsel %vm51_vm1, %v50_v13, 0.0  ;;  %v55_v30 = vrot.slane %v54_v22, 2  ;;  %v75_v32 = vadd.f32 %v74_v24, %v73_v19  ;;  %v82_v33 = vadd.f32 %v81_v25, %v80_v20  ;;  %s296_s26 = scalar_lea.vmem %s222_s25, 128  ;;  %p301_p11 = scmp.lt.s32.totalorder %s222_s25, %s222_s25 }
  0x24   :  { %245 = vmatpush3.msra.mxu0 %v108_v17  ;;  %v62_v31 = vrot.slane %v61_v23, 2  ;;  %v69_v34 = vrot.slane %v68_v26, 2  ;;  %v89_v35 = vadd.f32 %v88_v27, %v87_v21  ;;  %v95_v36 = vrot.slane %v94_v28, 4  ;;  %p297_p10 = scmp.ne.s32.totalorder %s222_s25, %s296_s26  ;;  %p302_p12 = scmp.lt.s32.totalorder %s296_s26, %s296_s26 }
  0x25   :  { %v102_v37 = vrot.slane %v101_v29, 4  ;;  %v56_v38 = vadd.f32 %v55_v30, %v54_v22  ;;  %v76_v40 = vrot.slane %v75_v32, 2  ;;  %v83_v41 = vrot.slane %v82_v33, 2 }
  0x26   :  { %v63_v39 = vadd.f32 %v62_v31, %v61_v23  ;;  %v70_v42 = vadd.f32 %v69_v34, %v68_v26  ;;  %v90_v43 = vrot.slane %v89_v35, 2  ;;  %v96_v44 = vadd.f32 %v95_v36, %v94_v28  ;;  %p303_p13 = por %p302_p12, %p301_p11 }
  0x27   :  { %v103_v45 = vadd.f32 %v102_v37, %v101_v29  ;;  %v57_v46 = vrot.slane %v56_v38, 1  ;;  %v77_v48 = vadd.f32 %v76_v40, %v75_v32  ;;  %v84_v49 = vadd.f32 %v83_v41, %v82_v33 }
  0x28   :  { %v64_v47 = vrot.slane %v63_v39, 1  ;;  %v71_v50 = vrot.slane %v70_v42, 1  ;;  %v91_v51 = vadd.f32 %v90_v43, %v89_v35  ;;  %v97_v52 = vrot.slane %v96_v44, 2  ;;  %p304_p0 = pnand %p303_p13, %p297_p10 }
  0x29   :  { %v104_v53 = vrot.slane %v103_v45, 2  ;;  %v58_v54 = vadd.f32 %v57_v46, %v56_v38  ;;  %v78_v56 = vrot.slane %v77_v48, 1  ;;  %v85_v57 = vrot.slane %v84_v49, 1 }
  0x2a   :  { %v65_v55 = vadd.f32 %v64_v47, %v63_v39  ;;  %v72_v58 = vadd.f32 %v71_v50, %v70_v42  ;;  %v92_v59 = vrot.slane %v91_v51, 1  ;;  %v98_v60 = vadd.f32 %v97_v52, %v96_v44 }
  0x2b   :  { %v105_v61 = vadd.f32 %v104_v53, %v103_v45  ;;  %v79_v62 = vadd.f32 %v78_v56, %v77_v48  ;;  %v86_v63 = vadd.f32 %v85_v57, %v84_v49  ;;  %vm137_vm7 = vcmask 1046534  }
  0x2c   :  { %v128_v0 = vsel %vm127_vm2, %v65_v55, %v58_v54  ;;  %v93_v1 = vadd.f32 %v92_v59, %v91_v51  ;;  %v99_v2 = vrot.slane %v98_v60, 1  ;;  %vm139_vm8 = vcmask 1047559  }
  0x2d   :  { %v106_v3 = vrot.slane %v105_v61, 1  ;;  %v130_v4 = vsel %vm129_vm3, %v72_v58, %v128_v0 }
  0x2e   :  { %v132_v5 = vsel %vm131_vm4, %v79_v62, %v130_v4  ;;  %v100_v6 = vadd.f32 %v99_v2, %v98_v60 }
  0x2f   :  { %v107_v7 = vadd.f32 %v106_v3, %v105_v61  ;;  %v134_v8 = vsel %vm133_vm5, %v86_v63, %v132_v5 }
  0x30   :  { %v136_v9 = vsel %vm135_vm6, %v93_v1, %v134_v8 }
  0x31   :  { %v138_v10 = vsel %vm137_vm7, %v100_v6, %v136_v9 }
  0x32   :  { %v140_v11 = vsel %vm139_vm8, %v107_v7, %v138_v10 }
  0x33   :  { %247 = vmatmul.mubr.msk.f32.vlgmr.msra.gmra.mxu0 %vm51_vm1, %v140_v11 }
  0xf3   :  { %v209_v13 = vpop.f32.mrf.mxu0 }
  0xf4   :  { %v210_v14 = vadd.f32 %v231_v12, %v209_v13 }
  0xf5   :  { %v248_v15 = vpop.f32.mrf.mxu0 }
  0xf6   :  { %v213_v16 = vmax.f32 %v210_v14, 0.0 }
  0xf8   :  { %214 = vst [vmem:[#allocation7] sm:$0xff] %v213_v16 }
  0xf9   :  { %307 = shalt.err (!%p304_p0)
}
  0xfa   :  { %224 = dma.vmem_to_hbm [thread:$0]  %s222_s25, 128, %s377_s3, [#allocation4]  }
  0xfb   :  { %320 = dma.done.wait [#allocation4], 128  }
  0xfc   :  { %321 = vsyncadd [#allocation4], 4294967168 }
  0xfd   :  { %228 = vsyncpa [#allocation3], 1 }
  0xfe   :  { %229 = vsyncpa [#allocation6], 1 }
  0xff   :  { %230 = vsyncpa [#allocation4], 1 }

</bundles_post_ra>
